<compile_context>
chip_gen: v7x
topology: tpu7x:2x2x1
jax: 0.10.0
libtpu: 0.0.40
codegen_flags: <defaults>
</compile_context>

<pallas_src>
import jax
import jax.numpy as jnp
from jax.experimental import pallas as pl
from jax.experimental.pallas import tpu as pltpu


# ---------------------------------------------------------------- kernels ---

def _matmul_kernel_inplace(a_ref, b_ref, o_ref):
    """f32 output: accumulate directly into the resident output block."""
    @pl.when(pl.program_id(2) == 0)
    def _():
        o_ref[...] = jnp.zeros_like(o_ref)

    o_ref[...] += jnp.dot(
        a_ref[...], b_ref[...], preferred_element_type=jnp.float32
    )


def _matmul_kernel_scratch(a_ref, b_ref, o_ref, acc_ref):
    """Narrow output dtypes: accumulate in f32 scratch, cast once at the end."""
    @pl.when(pl.program_id(2) == 0)
    def _():
        acc_ref[...] = jnp.zeros_like(acc_ref)

    acc_ref[...] += jnp.dot(
        a_ref[...], b_ref[...], preferred_element_type=jnp.float32
    )

    @pl.when(pl.program_id(2) == pl.num_programs(2) - 1)
    def _():
        o_ref[...] = acc_ref[...].astype(o_ref.dtype)


# ---------------------------------------------------------------- helpers ---

def _round_up(x, m):
    return ((x + m - 1) // m) * m


def _sublane_align(dtype):
    """Native sublane packing: 8 rows for 4-byte, 16 for 2-byte, 32 for 1-byte."""
    return {4: 8, 2: 16, 1: 32}.get(jnp.dtype(dtype).itemsize, 8)


def _pick_tile(dim, cap, align):
    """Tile size: multiple of `align`; whole (aligned-up) dim if it fits under cap."""
    if dim <= cap:
        return _round_up(dim, align)
    return max(align, (cap // align) * align)


def _vmem_capacity_bytes():
    try:
        return int(pltpu.get_tpu_info().vmem_capacity_bytes)
    except Exception:
        return 64 << 20  # conservative (v7x per-TC VMEM)


# ---------------------------------------------------------------- wrapper ---

def matrix_forward(lin_mat, x, *, tm=None, tn=None, tk=None,
                   compute_dtype=None,
                   small_fallback_flops=4 * 1024 * 1024):
    """Pallas TPU implementation of Matrix.forward: lin_mat @ x."""
    M, K = lin_mat.shape
    K2, N = x.shape
    assert K == K2, "inner dims must match"
    out_dtype = jnp.result_type(lin_mat.dtype, x.dtype)

    # Integer matmuls: f32 accumulation would lose precision for wide int
    # results and v7x's MXU has no integer mode at all -> route to XLA.
    if not (jnp.issubdtype(lin_mat.dtype, jnp.floating)
            and jnp.issubdtype(x.dtype, jnp.floating)):
        return jnp.dot(lin_mat, x).astype(out_dtype)

    # Tiny shapes: per-call + ~0.35us/grid-step overhead dominates and the
    # MXU rows are badly under-utilized -> XLA's fused matmul is faster.
    if small_fallback_flops is not None and 2 * M * N * K < small_fallback_flops:
        return jnp.dot(lin_mat, x).astype(out_dtype)

    a, b = lin_mat, x
    if compute_dtype is not None:
        a = a.astype(compute_dtype)
        b = b.astype(compute_dtype)

    a_bytes = jnp.dtype(a.dtype).itemsize
    b_bytes = jnp.dtype(b.dtype).itemsize
    o_bytes = jnp.dtype(out_dtype).itemsize
    use_scratch = out_dtype != jnp.float32

    # Generation-aware tile caps / VMEM ceilings.
    vmem_cap = _vmem_capacity_bytes()
    if vmem_cap >= (96 << 20):            # v5e / v6e: 128 MiB physical VMEM
        caps, vmem_ceiling = (512, 1024, 1024), 96 << 20
    else:                                 # v7x: 64 MiB physical VMEM per TC
        caps, vmem_ceiling = (512, 1024, 512), 48 << 20

    m_align = _sublane_align(a.dtype)
    auto = tm is None and tn is None and tk is None
    if tm is None:
        tm = _pick_tile(M, caps[0], m_align)
    if tn is None:
        tn = _pick_tile(N, caps[1], 128)
    if tk is None:
        tk = _pick_tile(K, caps[2], 128)

    def _footprint(tm_, tn_, tk_):
        return (2 * (tm_ * tk_ * a_bytes + tk_ * tn_ * b_bytes)
                + 2 * tm_ * tn_ * o_bytes
                + (tm_ * tn_ * 4 if use_scratch else 0))

    if auto:
        # Megacore (v7x: 2 TensorCores sharded over the parallel grid axes):
        # make sure grid_i * grid_j >= 2 whenever the problem allows it.
        if pl.cdiv(M, tm) * pl.cdiv(N, tn) < 2:
            tn_half = max(128, _round_up(tn // 2, 128))
            tm_half = max(m_align, _round_up(tm // 2, m_align))
            if tn > 128 and pl.cdiv(N, tn_half) >= 2:
                tn = tn_half
            elif tm > m_align and pl.cdiv(M, tm_half) >= 2:
                tm = tm_half
        # Shrink tiles (never silently clamp the limit) until the
        # double-buffered footprint fits under the per-generation ceiling.
        while 2 * _footprint(tm, tn, tk) > vmem_ceiling:
            if tk > 128:
                tk = max(128, _round_up(tk // 2, 128))
            elif tn > 128:
                tn = max(128, _round_up(tn // 2, 128))
            elif tm > m_align:
                tm = max(m_align, _round_up(tm // 2, m_align))
            else:
                break

    # Pad to tile multiples (robust non-divisor handling). Zero-padded K
    # contributes nothing to the accumulation; padded M/N rows/cols are
    # sliced off the output.
    Mp, Kp, Np = _round_up(M, tm), _round_up(K, tk), _round_up(N, tn)
    if (Mp, Kp) != (M, K):
        a = jnp.pad(a, ((0, Mp - M), (0, Kp - K)))
    if (Kp, Np) != (K, N):
        b = jnp.pad(b, ((0, Kp - K), (0, Np - N)))

    grid = (Mp // tm, Np // tn, Kp // tk)

    kernel = _matmul_kernel_scratch if use_scratch else _matmul_kernel_inplace
    scratch_shapes = (
        [pltpu.VMEM((tm, tn), jnp.float32)] if use_scratch else []
    )

    vmem_limit = int(min(max(2 * _footprint(tm, tn, tk), 32 << 20),
                         vmem_ceiling))

    # Real tiled HBM traffic: A is re-fetched grid_n times, B grid_m times.
    cost = pl.CostEstimate(
        flops=2 * Mp * Np * Kp,
        transcendentals=0,
        bytes_accessed=(Mp * Kp * a_bytes * grid[1]
                        + Kp * Np * b_bytes * grid[0]
                        + Mp * Np * o_bytes),
    )

    out = pl.pallas_call(
        kernel,
        out_shape=jax.ShapeDtypeStruct((Mp, Np), out_dtype),
        grid_spec=pltpu.PrefetchScalarGridSpec(
            num_scalar_prefetch=0,
            grid=grid,
            in_specs=[
                pl.BlockSpec((tm, tk), lambda i, j, k: (i, k)),
                pl.BlockSpec((tk, tn), lambda i, j, k: (k, j)),
            ],
            out_specs=pl.BlockSpec((tm, tn), lambda i, j, k: (i, j)),
            scratch_shapes=scratch_shapes,
        ),
        compiler_params=pltpu.CompilerParams(
            dimension_semantics=("parallel", "parallel", "arbitrary"),
            vmem_limit_bytes=vmem_limit,
        ),
        cost_estimate=cost,
    )(a, b)

    if (Mp, Np) != (M, N):
        out = out[:M, :N]
    return out


if __name__ == "__main__":
    key = jax.random.PRNGKey(0)
    k1, k2, k3, k4, k5, k6, k7, k8 = jax.random.split(key, 8)
    rto = 0.01

    # Case 1: shape implied by the module (Matrix(row_d=32, col_d=128), 128
    # cols). Small enough to take the XLA fast path by default.
    row_d, col_d, n_cols = 32, 128, 128
    lin_mat = rto * jax.random.normal(k1, (row_d, col_d), dtype=jnp.float32)
    x = jax.random.normal(k2, (col_d, n_cols), dtype=jnp.float32)
    out = jax.block_until_ready(matrix_forward(lin_mat, x))
    ref = lin_mat @ x
    assert out.shape == (row_d, n_cols)
    assert jnp.allclose(out, ref, atol=1e-5, rtol=1e-5)

    # Case 2: Pallas path; exercises K-axis accumulation and the forced
    # megacore split of the parallel grid.
    row_d2, col_d2, n_cols2 = 128, 1024, 256
    lin_mat2 = rto * jax.random.normal(k3, (row_d2, col_d2), dtype=jnp.float32)
    x2 = jax.random.normal(k4, (col_d2, n_cols2), dtype=jnp.float32)
    out2 = jax.block_until_ready(matrix_forward(lin_mat2, x2))
    ref2 = lin_mat2 @ x2
    assert out2.shape == (row_d2, n_cols2)
    assert jnp.allclose(out2, ref2, atol=1e-3, rtol=1e-3)

    # Case 3: awkward (non-128/8-aligned) dims -> wrapper padding + slicing.
    row_d3, col_d3, n_cols3 = 96, 320, 200
    lin_mat3 = rto * jax.random.normal(k5, (row_d3, col_d3), dtype=jnp.float32)
    x3 = jax.random.normal(k6, (col_d3, n_cols3), dtype=jnp.float32)
    out3 = jax.block_until_ready(matrix_forward(lin_mat3, x3))
    ref3 = lin_mat3 @ x3
    assert out3.shape == (row_d3, n_cols3)
    assert jnp.allclose(out3, ref3, atol=1e-3, rtol=1e-3)

    # Case 4: bf16 inputs -> scratch-accumulator path (f32 acc, bf16 store).
    row_d4, col_d4, n_cols4 = 128, 256, 256
    lin_mat4 = (rto * jax.random.normal(k7, (row_d4, col_d4))).astype(jnp.bfloat16)
    x4 = jax.random.normal(k8, (col_d4, n_cols4)).astype(jnp.bfloat16)
    out4 = jax.block_until_ready(matrix_forward(lin_mat4, x4))
    ref4 = jnp.dot(lin_mat4.astype(jnp.float32), x4.astype(jnp.float32))
    assert out4.shape == (row_d4, n_cols4)
    assert jnp.allclose(out4.astype(jnp.float32), ref4, atol=2e-2, rtol=5e-2)

    print("KERNEL_OK")
</pallas_src>

<mosaic_0001>
module attributes {stable_mosaic.version = 11 : i64} {
  func.func @_matmul_kernel_inplace(%arg0: i32, %arg1: i32, %arg2: i32, %arg3: memref<128x512xf32, #tpu.memory_space<vmem>>, %arg4: memref<512x128xf32, #tpu.memory_space<vmem>>, %arg5: memref<128x128xf32, #tpu.memory_space<vmem>>) attributes {dimension_semantics = [#tpu.dimension_semantics<parallel>, #tpu.dimension_semantics<parallel>, #tpu.dimension_semantics<arbitrary>], iteration_bounds = array<i64: 1, 2, 2>, scalar_prefetch = 0 : i64, scratch_operands = 0 : i64, tpu.core_type = #tpu.core_type<tc>, window_params = [{transform_indices = @transform_0, window_bounds = array<i64: 128, 512>}, {transform_indices = @transform_1, window_bounds = array<i64: 512, 128>}, {transform_indices = @transform_2, window_bounds = array<i64: 128, 128>}]} {
    %c0_i32 = arith.constant 0 : i32
    %0 = arith.cmpi eq, %arg2, %c0_i32 : i32
    %1 = arith.extui %0 : i1 to i32
    %c0_i32_0 = arith.constant 0 : i32
    %2 = arith.cmpi ne, %1, %c0_i32_0 : i32
    scf.if %2 {
      %cst_8 = arith.constant 0.000000e+00 : f32
      %9 = vector.broadcast %cst_8 : f32 to vector<128x128xf32>
      %c0_9 = arith.constant 0 : index
      %c0_10 = arith.constant 0 : index
      %10 = vector.load %arg5[%c0_9, %c0_10] : memref<128x128xf32, #tpu.memory_space<vmem>>, vector<128x128xf32>
      tpu.vector_store %arg5[%c0_9, %c0_10], %9 {strides = array<i32>} : memref<128x128xf32, #tpu.memory_space<vmem>>, vector<128x128xf32>,
    } else {
    }
    %c0 = arith.constant 0 : index
    %c0_1 = arith.constant 0 : index
    %3 = vector.load %arg5[%c0, %c0_1] : memref<128x128xf32, #tpu.memory_space<vmem>>, vector<128x128xf32>
    %c0_2 = arith.constant 0 : index
    %c0_3 = arith.constant 0 : index
    %4 = vector.load %arg3[%c0_2, %c0_3] : memref<128x512xf32, #tpu.memory_space<vmem>>, vector<128x512xf32>
    %c0_4 = arith.constant 0 : index
    %c0_5 = arith.constant 0 : index
    %5 = vector.load %arg4[%c0_4, %c0_5] : memref<512x128xf32, #tpu.memory_space<vmem>>, vector<512x128xf32>
    %cst = arith.constant dense<0.000000e+00> : vector<128x128xf32>
    %6 = tpu.matmul %4, %5, %cst {dimension_numbers = #tpu.dot_dimension_numbers<[1], [0], [0], [1], [0, 0, 1, 1], [], []>} : vector<128x512xf32>, vector<512x128xf32>, vector<128x128xf32> -> vector<128x128xf32>
    %7 = arith.addf %3, %6 : vector<128x128xf32>
    %c0_6 = arith.constant 0 : index
    %c0_7 = arith.constant 0 : index
    %8 = vector.load %arg5[%c0_6, %c0_7] : memref<128x128xf32, #tpu.memory_space<vmem>>, vector<128x128xf32>
    tpu.vector_store %arg5[%c0_6, %c0_7], %7 {strides = array<i32>} : memref<128x128xf32, #tpu.memory_space<vmem>>, vector<128x128xf32>,
    return
  }
  func.func @transform_0(%arg0: i32, %arg1: i32, %arg2: i32) -> (i32, i32) {
    %c0_i32 = arith.constant 0 : i32
    return %arg0, %arg2 : i32, i32
  }
  func.func @transform_1(%arg0: i32, %arg1: i32, %arg2: i32) -> (i32, i32) {
    %c0_i32 = arith.constant 0 : i32
    return %arg2, %arg1 : i32, i32
  }
  func.func @transform_2(%arg0: i32, %arg1: i32, %arg2: i32) -> (i32, i32) {
    %c0_i32 = arith.constant 0 : i32
    return %arg0, %arg1 : i32, i32
  }
}

</mosaic_0001>

<bundles_post_ra>
// kernel: tpu_custom_call.1
= control target key start
LH: loop header
LB: loop body
LE: loop exit
PB: predicated region body
PF: predicated region fallthrough
CT: control target
= control target key end

     0   :  { %s2024_s0 = inlined_call_operand.hbm [shape: f32[128,1024], index: 0, kind: input, shape index: {}]   ;;  %s2025_s1 = inlined_call_operand.hbm [shape: f32[1024,256], index: 1, kind: input, shape index: {}]   ;;  %s2026_s2 = inlined_call_operand.hbm [shape: f32[128,256], index: 2, kind: output, shape index: {}]  }
   0x1   :  { %2037 = sst [smem:[#allocation15_spill]] %s2024_s0 }
   0x2   :  { %2038 = sst [smem:[#allocation16_spill]] %s2026_s2 }
   0x3   :  { %7 = vsyncpa [#allocation3], 0 }
   0x4   :  { %9 = vsyncpa [#allocation3 + $0x1], 0 }
   0x5   :  { %10 = vsyncpa [#allocation6], 0 }
   0x6   :  { %12 = vsyncpa [#allocation6 + $0x1], 0 }
   0x7   :  { %13 = vsyncpa [#allocation4], 0 }
   0x8   :  { %15 = vsyncpa [#allocation4 + $0x1], 0  ;;  %s1482_s9 = smov 0   ;;  %s1484_s10 = smov 0  }
   0x9   :  { %s1486_s11 = smov 0   ;;  %s1488_s12 = smov 0  }
   0xa   :  { %s1490_s13 = smov 0   ;;  %s1492_s14 = smov 0  }
   0xb   :  { %s1494_s15 = smov 0   ;;  %s1496_s16 = smov 0  }
   0xc   :  { %s1498_s17 = smov 0   ;;  %s1500_s18 = smov 0  }
   0xd   :  { %s1502_s19 = smov 0   ;;  %s1504_s20 = smov 0  }
   0xe   :  { %s1506_s21 = smov 0   ;;  %s1508_s22 = smov 0  }
   0xf LB: > { %2039 = sst [smem:[#allocation11_spill]] %s1432_s17  ;;  %s855_s23 = sadd.s32 4294967295, %s1452_s22   ;;  %s1452_s22 = sphi %s1508_s22, %s21_s22   ;;  %s1448_s21 = sphi %s1506_s21, %s2083_s21   ;;  %s1444_s20 = sphi %s1504_s20, %s2082_s20   ;;  %s1440_s19 = sphi %s1502_s19, %s2081_s19   ;;  %s1436_s18 = sphi %s1500_s18, %s2080_s18   ;;  %s1432_s17 = sphi %s1498_s17, %s2079_s17   ;;  %s1428_s16 = sphi %s1496_s16, %s2078_s16   ;;  %s1424_s15 = sphi %s1494_s15, %s2077_s15   ;;  %s1420_s14 = sphi %s1492_s14, %s2076_s14   ;;  %s1416_s13 = sphi %s1490_s13, %s2075_s13   ;;  %s1412_s12 = sphi %s1488_s12, %s2074_s12   ;;  %s1408_s11 = sphi %s1486_s11, %s2073_s11   ;;  %s1404_s10 = sphi %s1484_s10, %s2072_s10   ;;  %s1400_s9 = sphi %s1482_s9, %s2071_s9  }
  0x10   : > { %s33_s24 = sadd.s32 1, %s1444_s20  ;;  %s49_s26 = sadd.s32 1, %s1432_s17 }
  0x11   : > { %p1552_p0 = scmp.ge.s32.totalorder %s33_s24, 2  ;;  %p56_p1 = scmp.ne.s32.totalorder %s1432_s17, %s1428_s16 }
  0x12   : > { %p2030_p2 = scmp.eq.s32.totalorder %s1452_s22, 0  ;;  %p62_p4 = scmp.ne.s32.totalorder %s1428_s16, %s1424_s15 }
  0x13   : > { %s2085_s24 = smov (%p1552_p0, %s33_s24), 0  ;;  %p1575_p5 = scmp.eq.s32.totalorder %s855_s23, 0 }
  0x14   : > { %2041 = sst [smem:[#allocation12_spill]] %s2085_s24  ;;  %p1566_p3 = por %p2030_p2, %p56_p1 }
  0x15   : > { %s1573_s28 = ssub.s32 %s1444_s20, %s2085_s24  ;;  %p1580_p7 = scmp.eq.s32.totalorder %s855_s23, 3 }
  0x16   : > { %s2043_s29 = scalar_select %p1575_p5, 1, 0 }
  0x17   : > { %p47_p6 = scmp.eq.s32.totalorder %s1573_s28, 0  ;;  %p1586_p8 = por %p1575_p5, %p62_p4 }
  0x18   : > { %s2044_s30 = scalar_select %p1580_p7, 1, 0 }
  0x19   : > { %s2045_s3 = scalar_select %p1586_p8, 1, 0 }
  0x1a   : > { %s1591_s4 = scalar_select %p47_p6, %s1432_s17, %s49_s26  }
  0x1b   : > { %p2029_p9 = scmp.lt.s32.totalorder %s1452_s22, 4  ;;  %s142_s5 = sand.u32 1, %s1432_s17  }
  0x1c   : > { %2046 = sst [smem:[#allocation13_spill]] %s1591_s4  ;;  %s859_s6 = sshll.u32 %s142_s5, 9 }
  0x1d   : > { %s875_s7 = sshll.u32 %s1444_s20, 9  ;;  %s2047_s0 = sld [smem:[#allocation15_spill]] }
  0x1e   : > { %s146_s23 = scalar_lea.vmem [#allocation2], %s859_s6  ;;  %p1607_p10 = pnand %p2029_p9, %p1566_p3 }
  0x1f   : > { %s156_s2 = sshll.u32 %s146_s23, 4  ;;  %s1611_s4 = scalar_lea.sflag [#allocation3], %s142_s5  ;;  %s1601_s2 = int_to_ptr.vmem [resolvable:$true] %s156_s2 }
  0x20   : > { %p1244_p12 = pneg %p1607_p10 }
  0x23   : > { %s1599_s24 = scalar_lea.hbm %s2047_s0, %s875_s7  ;;  %s1247_s27 = scalar_lea.hbm %s2047_s0, 16384 }
  0x24   : > { %s1242_s7 = scalar_lea.hbm %s1599_s24, 8192  ;;  %p1248_p3 = scmp.lt.u32.totalorder %s1599_s24, %s2047_s0 }
  0x25   : > { %p1243_p11 = scmp.ne.s32.totalorder %s1599_s24, %s1242_s7  ;;  %p1249_p4 = scmp.lt.u32.totalorder %s1247_s27, %s1242_s7 }
  0x26   : > { %p1251_p9 = scmp.lt.u32.totalorder %s1242_s7, %s1599_s24 }
  0x27   : > { %p1245_p13 = pnand %p1244_p12, %p1243_p11  ;;  %p1250_p6 = por %p1249_p4, %p1248_p3 }
  0x29   : > { %p1246_p1 = pneg %p1245_p13  ;;  %p1252_p2 = por %p1251_p9, %p1250_p6 }
  0x2b   : > { %p1253_p8 = pnand %p1252_p2, %p1246_p1 }
  0x2d   : > { %1256 = shalt.err (!%p1253_p8)
}
  0x2e   : > { %s1257_s5 = scalar_lea.vmem %s1601_s2, 8192  ;;  %s1454_s6 = smov [#allocation2]  }
  0x2f   : > { %p1258_p11 = scmp.ne.s32.totalorder %s1601_s2, %s1257_s5  ;;  %s1262_s8 = sshll.u32 %s1454_s6, 4  ;;  %s1263_s8 = int_to_ptr.vmem [resolvable:$false] %s1262_s8 }
  0x30   : > { %s1264_s15 = scalar_lea.vmem %s1263_s8, 16384  ;;  %p1265_p5 = scmp.lt.s32.totalorder %s1601_s2, %s1263_s8 }
  0x31   : > { %p1260_p13 = pnand %p1258_p11, %p1244_p12  ;;  %p1266_p3 = scmp.lt.s32.totalorder %s1264_s15, %s1257_s5 }
  0x33   : > { %p1261_p7 = pneg %p1260_p13  ;;  %p1267_p4 = por %p1266_p3, %p1265_p5 }
  0x35   : > { %p1268_p9 = pnand %p1267_p4, %p1261_p7 }
  0x37   : > { %1271 = shalt.err (!%p1268_p9)
}
  0x38   : > { %s1455_s7 = smov 1024   ;;  %s1456_s27 = smov 512  }
  0x39   : > { %s1457_s23 = smov 32   ;;  %p866_p2 = scmp.ge.s32.totalorder %s1452_s22, 1 }
  0x3a   : > { %1110 = dma.hbm_to_vmem [thread:$0]  (!%p1607_p10), %s1599_s24, 8192, %s1601_s2, %s1611_s4, %s1455_s7, %s1456_s27, %s1457_s23  }
  0x3b   : > { %p187_p5 = scmp.lt.s32.totalorder %s1452_s22, 5  ;;  %s856_s6 = sadd.s32 4294967294, %s1452_s22  }
  0x3c   : > { %s36_s8 = sadd.s32 1, %s1448_s21  ;;  %s77_s15 = sadd.s32 1, %s1420_s14 }
  0x3d   : > { %p1641_p7 = pnand %p866_p2, %p187_p5  ;;  %s2087_s8 = smov (!%p1552_p0, %s36_s8), %s1448_s21 }
  0x3e   : > { %p84_p8 = scmp.ne.s32.totalorder %s1420_s14, %s1416_s13  ;;  %p90_p10 = scmp.ne.s32.totalorder %s1416_s13, %s1412_s12 }
  0x3f   : > { %p38_p12 = scmp.ge.s32.totalorder %s2087_s8, 2  ;;  %s105_s2 = sadd.s32 1, %s1408_s11 }
  0x40   : > { %p2050_p1 = scmp.eq.s32.totalorder %s1452_s22, 0  ;;  %p2052_p11 = scmp.ne.s32.totalorder %s2043_s29, 0 }
  0x41   : > { %s2089_s8 = smov (%p38_p12, %s2087_s8), 0  ;;  %p115_p0 = scmp.ne.s32.totalorder %s1408_s11, %s1404_s10 }
  0x42   : > { %p1658_p6 = por %p84_p8, %p2050_p1  ;;  %p1664_p13 = por %p90_p10, %p2052_p11 }
  0x43   : > { %2054 = sst [smem:[#allocation14_spill]] %s2089_s8  ;;  %p121_p3 = scmp.ne.s32.totalorder %s1404_s10, %s1400_s9 }
  0x44   : > { %s2053_s4 = scalar_select %p1664_p13, 1, 0 }
  0x45   : > { %s73_s12 = ssub.s32 %s1448_s21, %s2089_s8  ;;  %p122_p4 = scmp.eq.s32.totalorder %s856_s6, 3 }
  0x46   : > { %s74_s25 = sor.u32 %s73_s12, %s1573_s28  ;;  %p103_p9 = scmp.eq.s32.totalorder %s73_s12, 0 }
  0x47   : > { %p75_p2 = scmp.eq.s32.totalorder %s74_s25, 0  ;;  %p2055_p5 = scmp.ne.s32.totalorder %s2044_s30, 0 }
  0x48   : > { %s1684_s26 = scalar_select %p103_p9, %s1408_s11, %s105_s2  }
  0x49   : > { %p1679_p8 = por %p2055_p5, %p115_p0  ;;  %p1689_p10 = por %p122_p4, %p121_p3 }
  0x4a   : > { %s1687_s7 = scalar_select %p75_p2, %s1420_s14, %s77_s15  }
  0x4b   : > { %s2056_s29 = scalar_select %p1679_p8, 1, 0 }
  0x4c   : > { %s2057_s27 = scalar_select %p1689_p10, 1, 0 }
  0x4d   : > { %s166_s23 = sand.u32 1, %s1420_s14   ;;  %s876_s28 = sshll.u32 %s1444_s20, 7 }
  0x4e   : > { %s862_s6 = sshll.u32 %s166_s23, 9  ;;  %s176_s0 = sadd.s32 %s1448_s21, %s876_s28 }
  0x4f   : > { %s170_s8 = scalar_lea.vmem [#allocation5], %s862_s6  ;;  %s865_s25 = sshll.u32 %s176_s0, 7 }
  0x50   : > { %s179_s12 = sshll.u32 %s170_s8, 4  ;;  %s1701_s2 = scalar_lea.hbm %s2025_s1, %s865_s25  ;;  %s1696_s12 = int_to_ptr.vmem [resolvable:$true] %s179_s12 }
  0x51   : > { %p2058_p12 = scmp.lt.s32.totalorder %s1452_s22, 4  ;;  %s1711_s0 = scalar_lea.sflag [#allocation6], %s166_s23 }
  0x52   : > { %s1272_s8 = scalar_lea.hbm %s1701_s2, 8192  ;;  %s1277_s6 = scalar_lea.hbm %s2025_s1, 32768 }
  0x53   : > { %p1707_p1 = pnand %p2058_p12, %p1658_p6  ;;  %p1273_p11 = scmp.ne.s32.totalorder %s1701_s2, %s1272_s8 }
  0x54   : > { %p1278_p6 = scmp.lt.u32.totalorder %s1701_s2, %s2025_s1  ;;  %p1279_p9 = scmp.lt.u32.totalorder %s1277_s6, %s1272_s8 }
  0x55   : > { %p1274_p0 = pneg %p1707_p1  ;;  %p1281_p5 = scmp.lt.u32.totalorder %s1272_s8, %s1701_s2 }
  0x56   : > { %p1280_p2 = por %p1279_p9, %p1278_p6 }
  0x57   : > { %p1275_p3 = pnand %p1274_p0, %p1273_p11 }
  0x58   : > { %p1282_p12 = por %p1281_p5, %p1280_p2 }
  0x59   : > { %p1276_p4 = pneg %p1275_p3 }
  0x5b   : > { %p1283_p10 = pnand %p1282_p12, %p1276_p4 }
  0x5d   : > { %1286 = shalt.err (!%p1283_p10)
}
  0x5e   : > { %s1287_s23 = scalar_lea.vmem %s1696_s12, 8192  ;;  %s1458_s30 = smov [#allocation5]  }
  0x5f   : > { %p1288_p11 = scmp.ne.s32.totalorder %s1696_s12, %s1287_s23  ;;  %s1292_s17 = sshll.u32 %s1458_s30, 4  ;;  %s1293_s17 = int_to_ptr.vmem [resolvable:$false] %s1292_s17 }
  0x60   : > { %s1294_s24 = scalar_lea.vmem %s1293_s17, 16384  ;;  %p1295_p13 = scmp.lt.s32.totalorder %s1696_s12, %s1293_s17 }
  0x61   : > { %p1290_p3 = pnand %p1288_p11, %p1274_p0  ;;  %p1296_p6 = scmp.lt.s32.totalorder %s1294_s24, %s1287_s23 }
  0x63   : > { %p1291_p8 = pneg %p1290_p3  ;;  %p1297_p9 = por %p1296_p6, %p1295_p13 }
  0x65   : > { %p1298_p2 = pnand %p1297_p9, %p1291_p8 }
  0x67   : > { %1301 = shalt.err (!%p1298_p2)
}
  0x68   : > { %s1459_s8 = smov 256   ;;  %s1460_s6 = smov 128  }
  0x69   : > { %s1461_s28 = smov 8   ;;  %191 = sbr.rel (%p1641_p7) target bundleno = 460 (0x1cc), region = 28 }
  0x6a   : > { %1113 = dma.hbm_to_vmem [thread:$0]  (!%p1707_p1), %s1701_s2, 8192, %s1696_s12, %s1711_s0, %s1459_s8, %s1460_s6, %s1461_s28  }
  0x6b   : > { %s193_s25 = sand.u32 (!%p1641_p7), 1, %s1428_s16   ;;  %p2060_p13 = scmp.ne.s32.totalorder (!%p1641_p7), %s2045_s3, 0 }
  0x6c   : > { %s867_s30 = sshll.u32 (!%p1641_p7), %s193_s25, 9  ;;  %s194_s23 = scalar_lea.sflag (!%p1641_p7), [#allocation3], %s193_s25 }
  0x6d   : > { %s1742_s17 = scalar_lea.vmem (!%p1641_p7), [#allocation2], %s867_s30 }
  0x70   : > { %1387 = dma.done.wait (%p2060_p13), %s194_s23, 8192  }
  0x71   : > { %1389 = vsyncadd (%p2060_p13), %s194_s23, 4294959104  ;;  %s202_s24 = sand.u32 1, %s1416_s13   ;;  %p2061_p7 = scmp.ne.s32.totalorder %s2053_s4, 0 }
  0x72   : > { %s868_s15 = sshll.u32 %s202_s24, 9  ;;  %s203_s12 = scalar_lea.sflag [#allocation6], %s202_s24 }
  0x73   : > { %s1749_s2 = scalar_lea.vmem [#allocation5], %s868_s15 }
  0x74   : > { %1391 = dma.done.wait (%p2061_p7), %s203_s12, 8192  }
  0x75   : > { %1393 = vsyncadd (%p2061_p7), %s203_s12, 4294959104  ;;  %s229_s5 = sand.u32 1, %s1404_s10   ;;  %p870_p8 = scmp.ne.s32.totalorder %s1436_s18, 0 }
  0x76   : > { %s869_s0 = sshll.u32 %s229_s5, 7  ;;  %v1462_v0 = vmov (!%p870_p8), 0.0  }
  0x77   : > { %s1758_s8 = scalar_lea.vmem [#allocation7], %s869_s0  ;;  %239 = sbr.rel (%p870_p8) target bundleno = 128 (0x80), region = 40 }
  0x78   : > { %240 = vst [vmem:[%s1758_s8] sm:$0xff] (!%p870_p8), %v1462_v0  ;;  %241 = vst [vmem:[%s1758_s8 + $0x8] sm:$0xff] (!%p870_p8), %v1462_v0 }
  0x79   : > { %242 = vst [vmem:[%s1758_s8 + $0x10] sm:$0xff] (!%p870_p8), %v1462_v0  ;;  %243 = vst [vmem:[%s1758_s8 + $0x18] sm:$0xff] (!%p870_p8), %v1462_v0 }
  0x7a   : > { %244 = vst [vmem:[%s1758_s8 + $0x20] sm:$0xff] (!%p870_p8), %v1462_v0  ;;  %245 = vst [vmem:[%s1758_s8 + $0x28] sm:$0xff] (!%p870_p8), %v1462_v0 }
  0x7b   : > { %246 = vst [vmem:[%s1758_s8 + $0x30] sm:$0xff] (!%p870_p8), %v1462_v0  ;;  %247 = vst [vmem:[%s1758_s8 + $0x38] sm:$0xff] (!%p870_p8), %v1462_v0 }
  0x7c   : > { %248 = vst [vmem:[%s1758_s8 + $0x40] sm:$0xff] (!%p870_p8), %v1462_v0  ;;  %249 = vst [vmem:[%s1758_s8 + $0x48] sm:$0xff] (!%p870_p8), %v1462_v0 }
  0x7d   : > { %250 = vst [vmem:[%s1758_s8 + $0x50] sm:$0xff] (!%p870_p8), %v1462_v0  ;;  %251 = vst [vmem:[%s1758_s8 + $0x58] sm:$0xff] (!%p870_p8), %v1462_v0 }
  0x7e   : > { %252 = vst [vmem:[%s1758_s8 + $0x60] sm:$0xff] %v1462_v0  ;;  %253 = vst [vmem:[%s1758_s8 + $0x68] sm:$0xff] %v1462_v0 }
  0x7f   : > { %254 = vst [vmem:[%s1758_s8 + $0x70] sm:$0xff] %v1462_v0  ;;  %255 = vst [vmem:[%s1758_s8 + $0x78] sm:$0xff] %v1462_v0 }
  0x80 PF: > { %v352_v1 = vld [vmem:[%s1749_s2 + $0x80] sm:$0xff]  ;;  %v353_v2 = vld [vmem:[%s1749_s2 + $0x88] sm:$0xff]  ;;  %v354_v12 = vld [vmem:[%s1749_s2 + $0x90] sm:$0xff]  ;;  %s872_s18 = sshll.u32 %s1440_s19, 7  ;;  %s738_s3 = sshll.u32 %s1758_s8, 4  ;;  %s1943_s3 = int_to_ptr.vmem [resolvable:$true] %s738_s3 }
  0x81   : > { %v384_v3 = vld [vmem:[%s1749_s2 + $0x180] sm:$0xff]  ;;  %v1037_v4 = vpack.c.bf16 %v353_v2, %v352_v1  ;;  %v385_v5 = vld [vmem:[%s1749_s2 + $0x188] sm:$0xff]  ;;  %v355_v14 = vld [vmem:[%s1749_s2 + $0x98] sm:$0xff]  ;;  %s2062_s28 = sld [smem:[#allocation16_spill]]  ;;  %s1948_s19 = scalar_lea.sflag [#allocation4], %s229_s5 }
  0x82   : > { %v336_v6 = vld [vmem:[%s1749_s2] sm:$0xff]  ;;  %v337_v7 = vld [vmem:[%s1749_s2 + $0x8] sm:$0xff]  ;;  %v1069_v8 = vpack.c.bf16 %v385_v5, %v384_v3  ;;  %v386_v15 = vld [vmem:[%s1749_s2 + $0x190] sm:$0xff]  ;;  %v1041_v17 = vpack.c.bf16 %v355_v14, %v354_v12  ;;  %s1302_s30 = scalar_lea.vmem %s1943_s3, 2048  ;;  %p2063_p1 = scmp.ne.s32.totalorder %s2056_s29, 0 }
  0x83   : > { %v1039_v9 = vpack.c.bf16 %v337_v7, %v336_v6  ;;  %v368_v10 = vld [vmem:[%s1749_s2 + $0x100] sm:$0xff]  ;;  %v369_v11 = vld [vmem:[%s1749_s2 + $0x108] sm:$0xff]  ;;  %1038 = vmatprep.subr.bf16.mxu0 %v1037_v4  ;;  %v387_v16 = vld [vmem:[%s1749_s2 + $0x198] sm:$0xff]  ;;  %p1303_p10 = scmp.ne.s32.totalorder %s1943_s3, %s1302_s30  ;;  %s1463_s23 = smov [#allocation7]  }
  0x84   : > { %v1071_v13 = vpack.c.bf16 %v369_v11, %v368_v10  ;;  %1070 = vmatprep.subr.bf16.mxu1 %v1069_v8  ;;  %v1073_v18 = vpack.c.bf16 %v387_v16, %v386_v15  ;;  %v338_v19 = vld [vmem:[%s1749_s2 + $0x10] sm:$0xff]  ;;  %v339_v20 = vld [vmem:[%s1749_s2 + $0x18] sm:$0xff]  ;;  %v356_v24 = vld [vmem:[%s1749_s2 + $0xa0] sm:$0xff] }
  0x85   : > { %1040 = vmatpush3.bf16.msra.mxu0 %v1039_v9  ;;  %v370_v21 = vld [vmem:[%s1749_s2 + $0x110] sm:$0xff]  ;;  %v1043_v22 = vpack.c.bf16 %v339_v20, %v338_v19  ;;  %v371_v23 = vld [vmem:[%s1749_s2 + $0x118] sm:$0xff]  ;;  %v357_v25 = vld [vmem:[%s1749_s2 + $0xa8] sm:$0xff]  ;;  %p1304_p0 = pnand %p1303_p10, %p2063_p1 }
  0x86   : > { %1072 = vmatpush3.bf16.msra.mxu1 %v1071_v13  ;;  %1042 = vmatprep.subr.bf16.mxu0 %v1041_v17  ;;  %v1075_v26 = vpack.c.bf16 %v371_v23, %v370_v21  ;;  %v1045_v27 = vpack.c.bf16 %v357_v25, %v356_v24  ;;  %v388_v28 = vld [vmem:[%s1749_s2 + $0x1a0] sm:$0xff]  ;;  %v389_v29 = vld [vmem:[%s1749_s2 + $0x1a8] sm:$0xff]  ;;  %v358_v36 = vld [vmem:[%s1749_s2 + $0xb0] sm:$0xff] }
  0x87   : > { %1074 = vmatprep.subr.bf16.mxu1 %v1073_v18  ;;  %v340_v30 = vld [vmem:[%s1749_s2 + $0x20] sm:$0xff]  ;;  %v1077_v31 = vpack.c.bf16 %v389_v29, %v388_v28  ;;  %v341_v32 = vld [vmem:[%s1749_s2 + $0x28] sm:$0xff]  ;;  %v359_v37 = vld [vmem:[%s1749_s2 + $0xb8] sm:$0xff]  ;;  %s1941_s25 = scalar_lea.hbm %s2062_s28, %s872_s18  ;;  %p1305_p4 = pneg %p1304_p0 }
  0x88   : > { %v372_v33 = vld [vmem:[%s1749_s2 + $0x120] sm:$0xff]  ;;  %v373_v34 = vld [vmem:[%s1749_s2 + $0x128] sm:$0xff]  ;;  %v1047_v35 = vpack.c.bf16 %v341_v32, %v340_v30  ;;  %v390_v38 = vld [vmem:[%s1749_s2 + $0x1b0] sm:$0xff]  ;;  %v1049_v40 = vpack.c.bf16 %v359_v37, %v358_v36 }
  0x89   : > { %1044 = vmatpush3.bf16.msra.mxu0 %v1043_v22  ;;  %v1079_v39 = vpack.c.bf16 %v373_v34, %v372_v33  ;;  %v391_v41 = vld [vmem:[%s1749_s2 + $0x1b8] sm:$0xff]  ;;  %v342_v42 = vld [vmem:[%s1749_s2 + $0x30] sm:$0xff]  ;;  %v360_v47 = vld [vmem:[%s1749_s2 + $0xc0] sm:$0xff] }
  0x8a   : > { %1076 = vmatpush3.bf16.msra.mxu1 %v1075_v26  ;;  %1046 = vmatprep.subr.bf16.mxu0 %v1045_v27  ;;  %v343_v43 = vld [vmem:[%s1749_s2 + $0x38] sm:$0xff]  ;;  %v1081_v44 = vpack.c.bf16 %v391_v41, %v390_v38  ;;  %v374_v45 = vld [vmem:[%s1749_s2 + $0x130] sm:$0xff]  ;;  %v361_v48 = vld [vmem:[%s1749_s2 + $0xc8] sm:$0xff] }
  0x8b   : > { %1078 = vmatprep.subr.bf16.mxu1 %v1077_v31  ;;  %v375_v46 = vld [vmem:[%s1749_s2 + $0x138] sm:$0xff]  ;;  %v392_v49 = vld [vmem:[%s1749_s2 + $0x1c0] sm:$0xff]  ;;  %v393_v50 = vld [vmem:[%s1749_s2 + $0x1c8] sm:$0xff]  ;;  %v1051_v51 = vpack.c.bf16 %v343_v43, %v342_v42  ;;  %v1053_v53 = vpack.c.bf16 %v361_v48, %v360_v47 }
  0x8c   : > { %v1083_v52 = vpack.c.bf16 %v375_v46, %v374_v45  ;;  %v344_v54 = vld [vmem:[%s1749_s2 + $0x40] sm:$0xff]  ;;  %v345_v55 = vld [vmem:[%s1749_s2 + $0x48] sm:$0xff]  ;;  %v1085_v57 = vpack.c.bf16 %v393_v50, %v392_v49  ;;  %v362_v59 = vld [vmem:[%s1749_s2 + $0xd0] sm:$0xff] }
  0x8d   : > { %1048 = vmatpush3.bf16.msra.mxu0 %v1047_v35  ;;  %v376_v56 = vld [vmem:[%s1749_s2 + $0x140] sm:$0xff]  ;;  %v377_v58 = vld [vmem:[%s1749_s2 + $0x148] sm:$0xff]  ;;  %v363_v60 = vld [vmem:[%s1749_s2 + $0xd8] sm:$0xff]  ;;  %v1055_v63 = vpack.c.bf16 %v345_v55, %v344_v54 }
  0x8e   : > { %1080 = vmatpush3.bf16.msra.mxu1 %v1079_v39  ;;  %1050 = vmatprep.subr.bf16.mxu0 %v1049_v40  ;;  %v394_v61 = vld [vmem:[%s1749_s2 + $0x1d0] sm:$0xff]  ;;  %v395_v62 = vld [vmem:[%s1749_s2 + $0x1d8] sm:$0xff]  ;;  %v1087_v0 = vpack.c.bf16 %v377_v58, %v376_v56  ;;  %v1057_v1 = vpack.c.bf16 %v363_v60, %v362_v59  ;;  %v364_v7 = vld [vmem:[%s1749_s2 + $0xe0] sm:$0xff] }
  0x8f   : > { %1082 = vmatprep.subr.bf16.mxu1 %v1081_v44  ;;  %v346_v2 = vld [vmem:[%s1749_s2 + $0x50] sm:$0xff]  ;;  %v347_v3 = vld [vmem:[%s1749_s2 + $0x58] sm:$0xff]  ;;  %v1089_v5 = vpack.c.bf16 %v395_v62, %v394_v61  ;;  %v365_v8 = vld [vmem:[%s1749_s2 + $0xe8] sm:$0xff] }
  0x90   : > { %v378_v4 = vld [vmem:[%s1749_s2 + $0x150] sm:$0xff]  ;;  %v379_v6 = vld [vmem:[%s1749_s2 + $0x158] sm:$0xff]  ;;  %v396_v9 = vld [vmem:[%s1749_s2 + $0x1e0] sm:$0xff]  ;;  %v1059_v11 = vpack.c.bf16 %v347_v3, %v346_v2  ;;  %v1061_v15 = vpack.c.bf16 %v365_v8, %v364_v7 }
  0x91   : > { %1052 = vmatpush3.bf16.msra.mxu0 %v1051_v51  ;;  %v397_v10 = vld [vmem:[%s1749_s2 + $0x1e8] sm:$0xff]  ;;  %v348_v12 = vld [vmem:[%s1749_s2 + $0x60] sm:$0xff]  ;;  %v1091_v14 = vpack.c.bf16 %v379_v6, %v378_v4  ;;  %v275_v18 = vld [vmem:[%s1742_s17 + $0x18] sm:$0xff] }
  0x92   : > { %1084 = vmatpush3.bf16.msra.mxu1 %v1083_v52  ;;  %1054 = vmatprep.subr.bf16.mxu0 %v1053_v53  ;;  %v349_v13 = vld [vmem:[%s1749_s2 + $0x68] sm:$0xff]  ;;  %v380_v16 = vld [vmem:[%s1749_s2 + $0x160] sm:$0xff]  ;;  %v1093_v19 = vpack.c.bf16 %v397_v10, %v396_v9  ;;  %v366_v21 = vld [vmem:[%s1749_s2 + $0xf0] sm:$0xff] }
  0x93   : > { %1086 = vmatprep.subr.bf16.mxu1 %v1085_v57  ;;  %v273_v17 = vld [vmem:[%s1742_s17 + $0x8] sm:$0xff]  ;;  %v367_v22 = vld [vmem:[%s1749_s2 + $0xf8] sm:$0xff]  ;;  %v398_v23 = vld [vmem:[%s1749_s2 + $0x1f0] sm:$0xff]  ;;  %609 = vmatprep.mubr.f32.mxu1 %v275_v18  ;;  %v1063_v25 = vpack.c.bf16 %v349_v13, %v348_v12 }
  0x94   : > { %v381_v20 = vld [vmem:[%s1749_s2 + $0x168] sm:$0xff]  ;;  %464 = vmatprep.mubr.f32.mxu0 %v273_v17  ;;  %v399_v24 = vld [vmem:[%s1749_s2 + $0x1f8] sm:$0xff]  ;;  %v1065_v27 = vpack.c.bf16 %v367_v22, %v366_v21  ;;  %v350_v28 = vld [vmem:[%s1749_s2 + $0x70] sm:$0xff] }
  0x95   : > { %1056 = vmatpush3.bf16.msra.mxu0 %v1055_v63  ;;  %v1095_v26 = vpack.c.bf16 %v381_v20, %v380_v16  ;;  %v351_v29 = vld [vmem:[%s1749_s2 + $0x78] sm:$0xff]  ;;  %v1097_v30 = vpack.c.bf16 %v399_v24, %v398_v23  ;;  %v382_v31 = vld [vmem:[%s1749_s2 + $0x170] sm:$0xff]  ;;  %v272_v35 = vld [vmem:[%s1742_s17] sm:$0xff] }
  0x96   : > { %1088 = vmatpush3.bf16.msra.mxu1 %v1087_v0  ;;  %1058 = vmatprep.subr.bf16.mxu0 %v1057_v1  ;;  %v383_v32 = vld [vmem:[%s1749_s2 + $0x178] sm:$0xff]  ;;  %v1067_v33 = vpack.c.bf16 %v351_v29, %v350_v28  ;;  %v274_v36 = vld [vmem:[%s1742_s17 + $0x10] sm:$0xff]  ;;  %v277_v37 = vld [vmem:[%s1742_s17 + $0x28] sm:$0xff] }
  0x97   : > { %1090 = vmatprep.subr.bf16.mxu1 %v1089_v5  ;;  %v1099_v34 = vpack.c.bf16 %v383_v32, %v382_v31  ;;  %v279_v38 = vld [vmem:[%s1742_s17 + $0x38] sm:$0xff]  ;;  %v276_v39 = vld [vmem:[%s1742_s17 + $0x20] sm:$0xff]  ;;  %v278_v40 = vld [vmem:[%s1742_s17 + $0x30] sm:$0xff] }
  0x98   : > { %v281_v41 = vld [vmem:[%s1742_s17 + $0x48] sm:$0xff]  ;;  %v283_v42 = vld [vmem:[%s1742_s17 + $0x58] sm:$0xff]  ;;  %v280_v43 = vld [vmem:[%s1742_s17 + $0x40] sm:$0xff] }
  0x99   : > { %1060 = vmatpush3.bf16.msra.mxu0 %v1059_v11  ;;  %v282_v44 = vld [vmem:[%s1742_s17 + $0x50] sm:$0xff]  ;;  %v285_v45 = vld [vmem:[%s1742_s17 + $0x68] sm:$0xff]  ;;  %v287_v46 = vld [vmem:[%s1742_s17 + $0x78] sm:$0xff] }
  0x9a   : > { %1092 = vmatpush3.bf16.msra.mxu1 %v1091_v14  ;;  %1062 = vmatprep.subr.bf16.mxu0 %v1061_v15  ;;  %v284_v47 = vld [vmem:[%s1742_s17 + $0x60] sm:$0xff]  ;;  %v286_v48 = vld [vmem:[%s1742_s17 + $0x70] sm:$0xff]  ;;  %v289_v49 = vld [vmem:[%s1742_s17 + $0x88] sm:$0xff] }
  0x9b   : > { %1094 = vmatprep.subr.bf16.mxu1 %v1093_v19  ;;  %v291_v50 = vld [vmem:[%s1742_s17 + $0x98] sm:$0xff]  ;;  %v288_v51 = vld [vmem:[%s1742_s17 + $0x80] sm:$0xff]  ;;  %v290_v52 = vld [vmem:[%s1742_s17 + $0x90] sm:$0xff] }
  0x9c   : > { %v293_v53 = vld [vmem:[%s1742_s17 + $0xa8] sm:$0xff]  ;;  %v295_v54 = vld [vmem:[%s1742_s17 + $0xb8] sm:$0xff]  ;;  %v292_v55 = vld [vmem:[%s1742_s17 + $0xa0] sm:$0xff] }
  0x9d   : > { %1064 = vmatpush3.bf16.msra.mxu0 %v1063_v25  ;;  %v294_v56 = vld [vmem:[%s1742_s17 + $0xb0] sm:$0xff]  ;;  %v297_v57 = vld [vmem:[%s1742_s17 + $0xc8] sm:$0xff]  ;;  %v299_v58 = vld [vmem:[%s1742_s17 + $0xd8] sm:$0xff] }
  0x9e   : > { %1096 = vmatpush3.bf16.msra.mxu1 %v1095_v26  ;;  %1066 = vmatprep.subr.bf16.mxu0 %v1065_v27  ;;  %v296_v59 = vld [vmem:[%s1742_s17 + $0xc0] sm:$0xff]  ;;  %v298_v60 = vld [vmem:[%s1742_s17 + $0xd0] sm:$0xff]  ;;  %v301_v61 = vld [vmem:[%s1742_s17 + $0xe8] sm:$0xff] }
  0x9f   : > { %1098 = vmatprep.subr.bf16.mxu1 %v1097_v30  ;;  %v303_v62 = vld [vmem:[%s1742_s17 + $0xf8] sm:$0xff]  ;;  %v300_v63 = vld [vmem:[%s1742_s17 + $0xe0] sm:$0xff]  ;;  %v302_v0 = vld [vmem:[%s1742_s17 + $0xf0] sm:$0xff] }
  0xa0   : > { %v305_v1 = vld [vmem:[%s1742_s17 + $0x108] sm:$0xff]  ;;  %v307_v2 = vld [vmem:[%s1742_s17 + $0x118] sm:$0xff]  ;;  %v304_v3 = vld [vmem:[%s1742_s17 + $0x100] sm:$0xff] }
  0xa1   : > { %1068 = vmatpush3.bf16.msra.mxu0 %v1067_v33  ;;  %v306_v4 = vld [vmem:[%s1742_s17 + $0x110] sm:$0xff]  ;;  %v309_v5 = vld [vmem:[%s1742_s17 + $0x128] sm:$0xff]  ;;  %v311_v6 = vld [vmem:[%s1742_s17 + $0x138] sm:$0xff] }
  0xa2   : > { %1100 = vmatpush3.bf16.msra.mxu1 %v1099_v34  ;;  %v308_v7 = vld [vmem:[%s1742_s17 + $0x120] sm:$0xff]  ;;  %v310_v8 = vld [vmem:[%s1742_s17 + $0x130] sm:$0xff]  ;;  %v313_v9 = vld [vmem:[%s1742_s17 + $0x148] sm:$0xff] }
  0xa3   : > { %v315_v10 = vld [vmem:[%s1742_s17 + $0x158] sm:$0xff]  ;;  %v312_v11 = vld [vmem:[%s1742_s17 + $0x140] sm:$0xff]  ;;  %v314_v12 = vld [vmem:[%s1742_s17 + $0x150] sm:$0xff] }
  0xa4   : > { %465 = vmatmul.mubr.f32.vlgmr.msra.gmra.mrb[0].mxu0 %v272_v35  ;;  %v317_v13 = vld [vmem:[%s1742_s17 + $0x168] sm:$0xff]  ;;  %v319_v14 = vld [vmem:[%s1742_s17 + $0x178] sm:$0xff]  ;;  %v316_v15 = vld [vmem:[%s1742_s17 + $0x160] sm:$0xff] }
  0xa5   : > { %610 = vmatmul.mubr.f32.vlgmr.msra.gmra.mrb[0].mxu1 %v274_v36  ;;  %469 = vmatprep.mubr.f32.mxu0 %v277_v37  ;;  %v318_v16 = vld [vmem:[%s1742_s17 + $0x170] sm:$0xff]  ;;  %v321_v17 = vld [vmem:[%s1742_s17 + $0x188] sm:$0xff]  ;;  %v323_v18 = vld [vmem:[%s1742_s17 + $0x198] sm:$0xff] }
  0xa6   : > { %614 = vmatprep.mubr.f32.mxu1 %v279_v38  ;;  %v320_v19 = vld [vmem:[%s1742_s17 + $0x180] sm:$0xff]  ;;  %v322_v20 = vld [vmem:[%s1742_s17 + $0x190] sm:$0xff]  ;;  %v325_v21 = vld [vmem:[%s1742_s17 + $0x1a8] sm:$0xff] }
  0xa7   : > { %v327_v22 = vld [vmem:[%s1742_s17 + $0x1b8] sm:$0xff]  ;;  %v324_v23 = vld [vmem:[%s1742_s17 + $0x1a0] sm:$0xff]  ;;  %v326_v24 = vld [vmem:[%s1742_s17 + $0x1b0] sm:$0xff] }
  0xa8   : > { %470 = vmatmul.mubr.f32.gmra.mrb[2].mxu0 %v276_v39  ;;  %v329_v25 = vld [vmem:[%s1742_s17 + $0x1c8] sm:$0xff]  ;;  %v331_v26 = vld [vmem:[%s1742_s17 + $0x1d8] sm:$0xff]  ;;  %v328_v27 = vld [vmem:[%s1742_s17 + $0x1c0] sm:$0xff] }
  0xa9   : > { %615 = vmatmul.mubr.f32.gmra.mrb[2].mxu1 %v278_v40  ;;  %474 = vmatprep.mubr.f32.mxu0 %v281_v41  ;;  %v330_v28 = vld [vmem:[%s1742_s17 + $0x1d0] sm:$0xff]  ;;  %v333_v29 = vld [vmem:[%s1742_s17 + $0x1e8] sm:$0xff]  ;;  %v335_v30 = vld [vmem:[%s1742_s17 + $0x1f8] sm:$0xff] }
  0xaa   : > { %619 = vmatprep.mubr.f32.mxu1 %v283_v42  ;;  %v332_v31 = vld [vmem:[%s1742_s17 + $0x1e0] sm:$0xff]  ;;  %v334_v32 = vld [vmem:[%s1742_s17 + $0x1f0] sm:$0xff]  ;;  %s1306_s17 = sshll.u32 %s1463_s23, 4  ;;  %s1307_s17 = int_to_ptr.vmem [resolvable:$false] %s1306_s17 }
  0xab   : > { %v256_v39 = vld [vmem:[%s1758_s8] sm:$0xff]  ;;  %s1308_s24 = scalar_lea.vmem %s1307_s17, 4096  ;;  %p1309_p5 = scmp.lt.s32.totalorder %s1943_s3, %s1307_s17 }
  0xac   : > { %475 = vmatmul.mubr.f32.gmra.mrb[4].mxu0 %v280_v43  ;;  %p1310_p12 = scmp.lt.s32.totalorder %s1308_s24, %s1302_s30 }
  0xad   : > { %620 = vmatmul.mubr.f32.gmra.mrb[4].mxu1 %v282_v44  ;;  %479 = vmatprep.mubr.f32.mxu0 %v285_v45 }
  0xae   : > { %624 = vmatprep.mubr.f32.mxu1 %v287_v46  ;;  %p1311_p11 = por %p1310_p12, %p1309_p5 }
  0xb0   : > { %480 = vmatmul.mubr.f32.gmra.mrb[6].mxu0 %v284_v47  ;;  %p1312_p3 = pnand %p1311_p11, %p1305_p4 }
  0xb1   : > { %625 = vmatmul.mubr.f32.gmra.mrb[6].mxu1 %v286_v48  ;;  %484 = vmatprep.mubr.f32.mxu0 %v289_v49  ;;  %v257_v48 = vld [vmem:[%s1758_s8 + $0x8] sm:$0xff] }
  0xb2   : > { %629 = vmatprep.mubr.f32.mxu1 %v291_v50 }
  0xb4   : > { %485 = vmatmul.mubr.f32.gmra.mrb[8].mxu0 %v288_v51 }
  0xb5   : > { %630 = vmatmul.mubr.f32.gmra.mrb[8].mxu1 %v290_v52  ;;  %489 = vmatprep.mubr.f32.mxu0 %v293_v53 }
  0xb6   : > { %634 = vmatprep.mubr.f32.mxu1 %v295_v54 }
  0xb8   : > { %490 = vmatmul.mubr.f32.gmra.mrb[10].mxu0 %v292_v55 }
  0xb9   : > { %635 = vmatmul.mubr.f32.gmra.mrb[10].mxu1 %v294_v56  ;;  %494 = vmatprep.mubr.f32.mxu0 %v297_v57  ;;  %v258_v57 = vld [vmem:[%s1758_s8 + $0x10] sm:$0xff] }
  0xba   : > { %639 = vmatprep.mubr.f32.mxu1 %v299_v58 }
  0xbc   : > { %495 = vmatmul.mubr.f32.gmra.mrb[12].mxu0 %v296_v59 }
  0xbd   : > { %640 = vmatmul.mubr.f32.gmra.mrb[12].mxu1 %v298_v60  ;;  %499 = vmatprep.mubr.f32.mxu0 %v301_v61 }
  0xbe   : > { %644 = vmatprep.mubr.f32.mxu1 %v303_v62 }
  0xc0   : > { %500 = vmatmul.mubr.f32.gmra.mrb[14].mxu0 %v300_v63 }
  0xc1   : > { %645 = vmatmul.mubr.f32.gmra.mrb[14].mxu1 %v302_v0  ;;  %504 = vmatprep.mubr.f32.mxu0 %v305_v1 }
  0xc2   : > { %649 = vmatprep.mubr.f32.mxu1 %v307_v2  ;;  %v259_v2 = vld [vmem:[%s1758_s8 + $0x18] sm:$0xff] }
  0xc4   : > { %505 = vmatmul.mubr.f32.gmra.mrb[16].mxu0 %v304_v3 }
  0xc5   : > { %650 = vmatmul.mubr.f32.gmra.mrb[16].mxu1 %v306_v4  ;;  %509 = vmatprep.mubr.f32.mxu0 %v309_v5 }
  0xc6   : > { %654 = vmatprep.mubr.f32.mxu1 %v311_v6 }
  0xc8   : > { %510 = vmatmul.mubr.f32.gmra.mrb[18].mxu0 %v308_v7 }
  0xc9   : > { %655 = vmatmul.mubr.f32.gmra.mrb[18].mxu1 %v310_v8  ;;  %514 = vmatprep.mubr.f32.mxu0 %v313_v9 }
  0xca   : > { %659 = vmatprep.mubr.f32.mxu1 %v315_v10 }
  0xcc   : > { %515 = vmatmul.mubr.f32.gmra.mrb[20].mxu0 %v312_v11  ;;  %v260_v11 = vld [vmem:[%s1758_s8 + $0x20] sm:$0xff] }
  0xcd   : > { %660 = vmatmul.mubr.f32.gmra.mrb[20].mxu1 %v314_v12  ;;  %519 = vmatprep.mubr.f32.mxu0 %v317_v13 }
  0xce   : > { %664 = vmatprep.mubr.f32.mxu1 %v319_v14 }
  0xd0   : > { %520 = vmatmul.mubr.f32.gmra.mrb[22].mxu0 %v316_v15 }
  0xd1   : > { %665 = vmatmul.mubr.f32.gmra.mrb[22].mxu1 %v318_v16  ;;  %524 = vmatprep.mubr.f32.mxu0 %v321_v17 }
  0xd2   : > { %669 = vmatprep.mubr.f32.mxu1 %v323_v18 }
  0xd4   : > { %525 = vmatmul.mubr.f32.gmra.mrb[24].mxu0 %v320_v19 }
  0xd5   : > { %670 = vmatmul.mubr.f32.gmra.mrb[24].mxu1 %v322_v20  ;;  %529 = vmatprep.mubr.f32.mxu0 %v325_v21  ;;  %v261_v20 = vld [vmem:[%s1758_s8 + $0x28] sm:$0xff] }
  0xd6   : > { %674 = vmatprep.mubr.f32.mxu1 %v327_v22 }
  0xd8   : > { %530 = vmatmul.mubr.f32.gmra.mrb[26].mxu0 %v324_v23 }
  0xd9   : > { %675 = vmatmul.mubr.f32.gmra.mrb[26].mxu1 %v326_v24  ;;  %534 = vmatprep.mubr.f32.mxu0 %v329_v25 }
  0xda   : > { %679 = vmatprep.mubr.f32.mxu1 %v331_v26 }
  0xdc   : > { %535 = vmatmul.mubr.f32.gmra.mrb[28].mxu0 %v328_v27 }
  0xdd   : > { %680 = vmatmul.mubr.f32.gmra.mrb[28].mxu1 %v330_v28  ;;  %539 = vmatprep.mubr.f32.mxu0 %v333_v29  ;;  %v262_v29 = vld [vmem:[%s1758_s8 + $0x30] sm:$0xff] }
  0xde   : > { %684 = vmatprep.mubr.f32.mxu1 %v335_v30 }
  0xe0   : > { %540 = vmatmul.mubr.f32.gmra.mrb[30].mxu0 %v332_v31 }
  0xe1   : > { %685 = vmatmul.mubr.f32.gmra.mrb[30].mxu1 %v334_v32 }
 0x177   : > { %v909_v33 = vpop.f32.mrb[0].mxu0 }
 0x178   : > { %v989_v34 = vpop.f32.mrb[0].mxu1  ;;  %v910_v35 = vpop.f32.mrb[1].mxu0 }
 0x179   : > { %v911_v36 = vadd.f32 %v910_v35, %v909_v33  ;;  %v990_v37 = vpop.f32.mrb[1].mxu1 }
 0x17a   : > { %v991_v38 = vadd.f32 %v990_v37, %v989_v34 }
 0x17b   : > { %v912_v40 = vpop.f32.mrb[2].mxu0 }
 0x17c   : > { %v612_v41 = vadd.f32 %v991_v38, %v911_v36  ;;  %v992_v42 = vpop.f32.mrb[2].mxu1  ;;  %v913_v43 = vpop.f32.mrb[3].mxu0  ;;  %v263_v38 = vld [vmem:[%s1758_s8 + $0x38] sm:$0xff] }
 0x17d   : > { %v914_v44 = vadd.f32 %v913_v43, %v912_v40  ;;  %v993_v45 = vpop.f32.mrb[3].mxu1 }
 0x17e   : > { %v690_v46 = vadd.f32 %v612_v41, %v256_v39  ;;  %v994_v47 = vadd.f32 %v993_v45, %v992_v42 }
 0x17f   : > { %v915_v49 = vpop.f32.mrb[4].mxu0 }
 0x180   : > { %706 = vst [vmem:[%s1758_s8] sm:$0xff] %v690_v46  ;;  %v617_v50 = vadd.f32 %v994_v47, %v914_v44  ;;  %v995_v51 = vpop.f32.mrb[4].mxu1  ;;  %v916_v52 = vpop.f32.mrb[5].mxu0  ;;  %v264_v47 = vld [vmem:[%s1758_s8 + $0x40] sm:$0xff] }
 0x181   : > { %v917_v53 = vadd.f32 %v916_v52, %v915_v49  ;;  %v996_v54 = vpop.f32.mrb[5].mxu1 }
 0x182   : > { %v691_v55 = vadd.f32 %v617_v50, %v257_v48  ;;  %v997_v56 = vadd.f32 %v996_v54, %v995_v51 }
 0x183   : > { %v918_v58 = vpop.f32.mrb[6].mxu0 }
 0x184   : > { %707 = vst [vmem:[%s1758_s8 + $0x8] sm:$0xff] %v691_v55  ;;  %v622_v59 = vadd.f32 %v997_v56, %v917_v53  ;;  %v998_v60 = vpop.f32.mrb[6].mxu1  ;;  %v919_v61 = vpop.f32.mrb[7].mxu0  ;;  %v265_v56 = vld [vmem:[%s1758_s8 + $0x48] sm:$0xff] }
 0x185   : > { %v920_v62 = vadd.f32 %v919_v61, %v918_v58  ;;  %v999_v63 = vpop.f32.mrb[7].mxu1 }
 0x186   : > { %v692_v0 = vadd.f32 %v622_v59, %v258_v57  ;;  %v1000_v1 = vadd.f32 %v999_v63, %v998_v60 }
 0x187   : > { %v921_v3 = vpop.f32.mrb[8].mxu0 }
 0x188   : > { %708 = vst [vmem:[%s1758_s8 + $0x10] sm:$0xff] %v692_v0  ;;  %v627_v4 = vadd.f32 %v1000_v1, %v920_v62  ;;  %v1001_v5 = vpop.f32.mrb[8].mxu1  ;;  %v922_v6 = vpop.f32.mrb[9].mxu0  ;;  %v266_v1 = vld [vmem:[%s1758_s8 + $0x50] sm:$0xff] }
 0x189   : > { %v923_v7 = vadd.f32 %v922_v6, %v921_v3  ;;  %v1002_v8 = vpop.f32.mrb[9].mxu1 }
 0x18a   : > { %v693_v9 = vadd.f32 %v627_v4, %v259_v2  ;;  %v1003_v10 = vadd.f32 %v1002_v8, %v1001_v5 }
 0x18b   : > { %v924_v12 = vpop.f32.mrb[10].mxu0 }
 0x18c   : > { %709 = vst [vmem:[%s1758_s8 + $0x18] sm:$0xff] %v693_v9  ;;  %v632_v13 = vadd.f32 %v1003_v10, %v923_v7  ;;  %v1004_v14 = vpop.f32.mrb[10].mxu1  ;;  %v925_v15 = vpop.f32.mrb[11].mxu0  ;;  %v267_v10 = vld [vmem:[%s1758_s8 + $0x58] sm:$0xff] }
 0x18d   : > { %v926_v16 = vadd.f32 %v925_v15, %v924_v12  ;;  %v1005_v17 = vpop.f32.mrb[11].mxu1 }
 0x18e   : > { %v694_v18 = vadd.f32 %v632_v13, %v260_v11  ;;  %v1006_v19 = vadd.f32 %v1005_v17, %v1004_v14 }
 0x18f   : > { %v927_v21 = vpop.f32.mrb[12].mxu0 }
 0x190   : > { %710 = vst [vmem:[%s1758_s8 + $0x20] sm:$0xff] %v694_v18  ;;  %v637_v22 = vadd.f32 %v1006_v19, %v926_v16  ;;  %v1007_v23 = vpop.f32.mrb[12].mxu1  ;;  %v928_v24 = vpop.f32.mrb[13].mxu0  ;;  %v268_v19 = vld [vmem:[%s1758_s8 + $0x60] sm:$0xff] }
 0x191   : > { %v929_v25 = vadd.f32 %v928_v24, %v927_v21  ;;  %v1008_v26 = vpop.f32.mrb[13].mxu1 }
 0x192   : > { %v695_v27 = vadd.f32 %v637_v22, %v261_v20  ;;  %v1009_v28 = vadd.f32 %v1008_v26, %v1007_v23 }
 0x193   : > { %v930_v30 = vpop.f32.mrb[14].mxu0 }
 0x194   : > { %711 = vst [vmem:[%s1758_s8 + $0x28] sm:$0xff] %v695_v27  ;;  %v642_v31 = vadd.f32 %v1009_v28, %v929_v25  ;;  %v1010_v32 = vpop.f32.mrb[14].mxu1  ;;  %v931_v33 = vpop.f32.mrb[15].mxu0  ;;  %v269_v28 = vld [vmem:[%s1758_s8 + $0x68] sm:$0xff] }
 0x195   : > { %v932_v34 = vadd.f32 %v931_v33, %v930_v30  ;;  %v1011_v35 = vpop.f32.mrb[15].mxu1 }
 0x196   : > { %v696_v36 = vadd.f32 %v642_v31, %v262_v29  ;;  %v1012_v37 = vadd.f32 %v1011_v35, %v1010_v32 }
 0x197   : > { %v933_v39 = vpop.f32.mrb[16].mxu0 }
 0x198   : > { %712 = vst [vmem:[%s1758_s8 + $0x30] sm:$0xff] %v696_v36  ;;  %v647_v40 = vadd.f32 %v1012_v37, %v932_v34  ;;  %v1013_v41 = vpop.f32.mrb[16].mxu1  ;;  %v934_v42 = vpop.f32.mrb[17].mxu0  ;;  %v270_v37 = vld [vmem:[%s1758_s8 + $0x70] sm:$0xff] }
 0x199   : > { %v935_v43 = vadd.f32 %v934_v42, %v933_v39  ;;  %v1014_v44 = vpop.f32.mrb[17].mxu1 }
 0x19a   : > { %v697_v45 = vadd.f32 %v647_v40, %v263_v38  ;;  %v1015_v46 = vadd.f32 %v1014_v44, %v1013_v41 }
 0x19b   : > { %v936_v48 = vpop.f32.mrb[18].mxu0 }
 0x19c   : > { %713 = vst [vmem:[%s1758_s8 + $0x38] sm:$0xff] %v697_v45  ;;  %v652_v49 = vadd.f32 %v1015_v46, %v935_v43  ;;  %v1016_v50 = vpop.f32.mrb[18].mxu1  ;;  %v937_v51 = vpop.f32.mrb[19].mxu0  ;;  %v271_v46 = vld [vmem:[%s1758_s8 + $0x78] sm:$0xff] }
 0x19d   : > { %v938_v52 = vadd.f32 %v937_v51, %v936_v48  ;;  %v1017_v53 = vpop.f32.mrb[19].mxu1 }
 0x19e   : > { %v698_v54 = vadd.f32 %v652_v49, %v264_v47  ;;  %v1018_v55 = vadd.f32 %v1017_v53, %v1016_v50 }
 0x19f   : > { %v939_v57 = vpop.f32.mrb[20].mxu0 }
 0x1a0   : > { %714 = vst [vmem:[%s1758_s8 + $0x40] sm:$0xff] %v698_v54  ;;  %v657_v58 = vadd.f32 %v1018_v55, %v938_v52  ;;  %v1019_v59 = vpop.f32.mrb[20].mxu1  ;;  %v940_v60 = vpop.f32.mrb[21].mxu0 }
 0x1a1   : > { %v941_v61 = vadd.f32 %v940_v60, %v939_v57  ;;  %v1020_v62 = vpop.f32.mrb[21].mxu1 }
 0x1a2   : > { %v699_v63 = vadd.f32 %v657_v58, %v265_v56  ;;  %v1021_v0 = vadd.f32 %v1020_v62, %v1019_v59 }
 0x1a3   : > { %v942_v2 = vpop.f32.mrb[22].mxu0 }
 0x1a4   : > { %715 = vst [vmem:[%s1758_s8 + $0x48] sm:$0xff] %v699_v63  ;;  %v662_v3 = vadd.f32 %v1021_v0, %v941_v61  ;;  %v1022_v4 = vpop.f32.mrb[22].mxu1  ;;  %v943_v5 = vpop.f32.mrb[23].mxu0 }
 0x1a5   : > { %v944_v6 = vadd.f32 %v943_v5, %v942_v2  ;;  %v1023_v7 = vpop.f32.mrb[23].mxu1 }
 0x1a6   : > { %v700_v8 = vadd.f32 %v662_v3, %v266_v1  ;;  %v1024_v9 = vadd.f32 %v1023_v7, %v1022_v4 }
 0x1a7   : > { %v945_v11 = vpop.f32.mrb[24].mxu0 }
 0x1a8   : > { %716 = vst [vmem:[%s1758_s8 + $0x50] sm:$0xff] %v700_v8  ;;  %v667_v12 = vadd.f32 %v1024_v9, %v944_v6  ;;  %v1025_v13 = vpop.f32.mrb[24].mxu1  ;;  %v946_v14 = vpop.f32.mrb[25].mxu0 }
 0x1a9   : > { %v947_v15 = vadd.f32 %v946_v14, %v945_v11  ;;  %v1026_v16 = vpop.f32.mrb[25].mxu1 }
 0x1aa   : > { %v701_v17 = vadd.f32 %v667_v12, %v267_v10  ;;  %v1027_v18 = vadd.f32 %v1026_v16, %v1025_v13 }
 0x1ab   : > { %v948_v20 = vpop.f32.mrb[26].mxu0 }
 0x1ac   : > { %717 = vst [vmem:[%s1758_s8 + $0x58] sm:$0xff] %v701_v17  ;;  %v672_v21 = vadd.f32 %v1027_v18, %v947_v15  ;;  %v1028_v22 = vpop.f32.mrb[26].mxu1  ;;  %v949_v23 = vpop.f32.mrb[27].mxu0 }
 0x1ad   : > { %v950_v24 = vadd.f32 %v949_v23, %v948_v20  ;;  %v1029_v25 = vpop.f32.mrb[27].mxu1 }
 0x1ae   : > { %v702_v26 = vadd.f32 %v672_v21, %v268_v19  ;;  %v1030_v27 = vadd.f32 %v1029_v25, %v1028_v22 }
 0x1af   : > { %v951_v29 = vpop.f32.mrb[28].mxu0 }
 0x1b0   : > { %718 = vst [vmem:[%s1758_s8 + $0x60] sm:$0xff] %v702_v26  ;;  %v677_v30 = vadd.f32 %v1030_v27, %v950_v24  ;;  %v1031_v31 = vpop.f32.mrb[28].mxu1  ;;  %v952_v32 = vpop.f32.mrb[29].mxu0 }
 0x1b1   : > { %v953_v33 = vadd.f32 %v952_v32, %v951_v29  ;;  %v1032_v34 = vpop.f32.mrb[29].mxu1 }
 0x1b2   : > { %v703_v35 = vadd.f32 %v677_v30, %v269_v28  ;;  %v1033_v36 = vadd.f32 %v1032_v34, %v1031_v31 }
 0x1b3   : > { %v954_v38 = vpop.f32.mrb[30].mxu0 }
 0x1b4   : > { %719 = vst [vmem:[%s1758_s8 + $0x68] sm:$0xff] %v703_v35  ;;  %v682_v39 = vadd.f32 %v1033_v36, %v953_v33  ;;  %v1034_v40 = vpop.f32.mrb[30].mxu1  ;;  %v955_v41 = vpop.f32.mrb[31].mxu0 }
 0x1b5   : > { %v956_v42 = vadd.f32 %v955_v41, %v954_v38  ;;  %v1035_v43 = vpop.f32.mrb[31].mxu1 }
 0x1b6   : > { %v704_v44 = vadd.f32 %v682_v39, %v270_v37  ;;  %v1036_v45 = vadd.f32 %v1035_v43, %v1034_v40 }
 0x1b8   : > { %720 = vst [vmem:[%s1758_s8 + $0x70] sm:$0xff] %v704_v44  ;;  %v687_v47 = vadd.f32 %v1036_v45, %v956_v42 }
 0x1ba   : > { %v705_v48 = vadd.f32 %v687_v47, %v271_v46 }
 0x1bc   : > { %721 = vst [vmem:[%s1758_s8 + $0x78] sm:$0xff] %v705_v48 }
 0x1bd   : > { %1315 = shalt.err (!%p1312_p3)
}
 0x1be   : > { %s1316_s15 = scalar_lea.hbm %s1941_s25, 2048  ;;  %s1320_s5 = scalar_lea.hbm %s2062_s28, 4096 }
 0x1bf   : > { %p1317_p6 = scmp.ne.s32.totalorder %s1941_s25, %s1316_s15  ;;  %p1321_p13 = scmp.lt.u32.totalorder %s1941_s25, %s2062_s28 }
 0x1c0   : > { %p1322_p7 = scmp.lt.u32.totalorder %s1320_s5, %s1316_s15  ;;  %p1324_p10 = scmp.lt.u32.totalorder %s1316_s15, %s1941_s25 }
 0x1c1   : > { %p1318_p9 = pnand %p1317_p6, %p2063_p1 }
 0x1c2   : > { %p1323_p8 = por %p1322_p7, %p1321_p13 }
 0x1c3   : > { %p1319_p2 = pneg %p1318_p9 }
 0x1c4   : > { %p1325_p0 = por %p1324_p10, %p1323_p8 }
 0x1c6   : > { %p1326_p4 = pnand %p1325_p0, %p1319_p2 }
 0x1c8   : > { %1329 = shalt.err (!%p1326_p4)
}
 0x1c9   : > { %s1464_s18 = smov 128   ;;  %s1465_s4 = smov 256  }
 0x1ca   : > { %s1466_s6 = smov 8  }
 0x1cb   : > { %1105 = dma.vmem_to_hbm [thread:$0]  (%p2063_p1), %s1943_s3, 2048, %s1941_s25, %s1948_s19, %s1464_s18, %s1465_s4, %s1466_s6  }
 0x1cc PF: > { %p1119_p5 = scmp.ge.s32.totalorder %s1452_s22, 2  ;;  %s753_s30 = sand.u32 1, %s1400_s9  }
 0x1cd   : > { %p2064_p12 = scmp.ne.s32.totalorder %s2057_s27, 0  ;;  %s754_s23 = scalar_lea.sflag [#allocation4], %s753_s30 }
 0x1cf   : > { %p1115_p11 = pnand %p1119_p5, %p2064_p12 }
 0x1d1   : > { %1395 = dma.done.wait (!%p1115_p11), %s754_s23, 2048  }
 0x1d2   : > { %1397 = vsyncadd (!%p1115_p11), %s754_s23, 4294965248  ;;  %s21_s22 = sadd.s32 1, %s1452_s22   ;;  %s2066_s29 = sld [smem:[#allocation11_spill]] }
 0x1d3   : > { %p1977_p3 = scmp.ge.s32.totalorder %s21_s22, 6   ;;  %s2067_s3 = sld [smem:[#allocation13_spill]] }
 0x1d4   : > { %s2068_s27 = sld [smem:[#allocation12_spill]]  ;;  %s2069_s25 = sld [smem:[#allocation14_spill]] }
 0x1d5   : > { %s2071_s9 = smov %s1404_s10  ;;  %s2072_s10 = smov %s1408_s11 }
 0x1d6   : > { %s2073_s11 = smov %s1684_s26  ;;  %s2074_s12 = smov %s1416_s13 }
 0x1d7   : > { %s2075_s13 = smov %s1420_s14  ;;  %s2076_s14 = smov %s1687_s7 }
 0x1d8   : > { %s2077_s15 = smov %s1428_s16  ;;  %s2078_s16 = smov %s2066_s29 }
 0x1d9   : > { %s2079_s17 = smov %s2067_s3  ;;  %s2080_s18 = smov %s1444_s20 }
 0x1da   : > { %s2081_s19 = smov %s1448_s21  ;;  %s2082_s20 = smov %s2068_s27 }
 0x1db   : > { %s2083_s21 = smov %s2069_s25  ;;  %20 = sbr.rel (!%p1977_p3) target bundleno = 15 (0xf), region = 90 }
 0x1e2   :  { %759 = vsyncpa [#allocation3], 1 }
 0x1e3   :  { %761 = vsyncpa [#allocation3 + $0x1], 1 }
 0x1e4   :  { %762 = vsyncpa [#allocation6], 1 }
 0x1e5   :  { %764 = vsyncpa [#allocation6 + $0x1], 1 }
 0x1e6   :  { %765 = vsyncpa [#allocation4], 1 }
 0x1e7   :  { %767 = vsyncpa [#allocation4 + $0x1], 1 }

</bundles_post_ra>
